<compile_context>
chip_gen: v5e
topology: v5e:2x2
jax: 0.10.0
libtpu: 0.0.40
codegen_flags: <defaults>
</compile_context>

<pallas_src>
import functools

import jax
import jax.numpy as jnp
from jax.experimental import pallas as pl
from jax.experimental.pallas import tpu as pltpu


def _mil_kernel(x_ref, w_ref, b1m_ref, o_ref, *, c_pad):
    """One block of Bblk images per grid step.

    x_ref:   (Bblk, N, dim_in)
    w_ref:   (dim_in, 2*C)     head0 in lanes [0,C), head1 in lanes [C,2C)
    b1m_ref: (1, C)            b1 for valid lanes, -1e30 for padded lanes
    o_ref:   (Bblk, N, C)
    """
    bb, n, dim_in = x_ref.shape

    # One fused matmul for both linear heads against the resident weight tile.
    # LHS stays in its input dtype (bf16 path on MXU if provided); f32 accum.
    x = x_ref[...].reshape(bb * n, dim_in)
    s = jnp.dot(x, w_ref[...], preferred_element_type=jnp.float32)
    s = s.reshape(bb, n, 2 * c_pad)

    # Lane-tile-aligned value slices (C is a multiple of 128).
    s0 = s[:, :, :c_pad]                       # mil_score0 logits (b0 cancels)
    s1 = s[:, :, c_pad:] + b1m_ref[...]        # bias + padded-lane mask fused

    # softmax over ROIs (axis 1), per image and per class lane.
    e0 = jnp.exp(s0 - jnp.max(s0, axis=1, keepdims=True))
    sm0 = e0 * pl.reciprocal(jnp.sum(e0, axis=1, keepdims=True), approx=True)

    # softmax over classes (axis 2); padded lanes contribute exp(-1e30) = 0.
    e1 = jnp.exp(s1 - jnp.max(s1, axis=2, keepdims=True))
    sm1 = e1 * pl.reciprocal(jnp.sum(e1, axis=2, keepdims=True), approx=True)

    o_ref[...] = (sm0 * sm1).astype(o_ref.dtype)


def pack_mil_params(w0, b0, w1, b1):
    """Pack PyTorch-layout params (dim_out, dim_in)/(dim_out,) into a single
    lane-tile-padded weight (dim_in, 2*C) and a fused bias+mask (1, C).
    Do this ONCE, outside the per-call hot path.

    b0 is dropped: it is constant across rows, so it cancels exactly in the
    axis-0 softmax.  b1 is fused with the -1e30 mask for padded head-1 lanes.
    """
    dim_out, dim_in = w0.shape
    c_pad = ((dim_out + 127) // 128) * 128

    w_cat = jnp.zeros((dim_in, 2 * c_pad), dtype=w0.dtype)
    w_cat = w_cat.at[:, :dim_out].set(w0.T)
    w_cat = w_cat.at[:, c_pad:c_pad + dim_out].set(w1.T)

    b1m = jnp.full((1, c_pad), -1e30, dtype=jnp.float32)
    b1m = b1m.at[0, :dim_out].set(b1.astype(jnp.float32))

    del b0  # cancels in softmax(dim=0)
    return w_cat, b1m, dim_out, c_pad


def _choose_block_batch(batch, n, dim_in, c_pad, in_itemsize,
                        max_rows=1024, vmem_budget=24 << 20):
    """Largest divisor of `batch` whose double-buffered working set fits a
    conservative scoped-VMEM budget (safe on v7x's smaller VMEM) while keeping
    the MXU row dimension well filled for small-N workloads."""
    w_bytes = 2 * dim_in * 2 * c_pad * 4          # double-buffered weight (f32 upper bound)
    best = 1
    for bb in range(1, batch + 1):
        if batch % bb:
            continue
        x_bytes = 2 * bb * n * dim_in * in_itemsize   # double-buffered input block
        o_bytes = 2 * bb * n * c_pad * 4              # double-buffered f32 output block
        if bb * n > max_rows or (x_bytes + o_bytes + w_bytes) > vmem_budget:
            break  # monotone in bb -> all larger divisors also exceed
        best = bb
    return best


def mil_forward_packed(x, w_cat, b1m, dim_out, c_pad):
    """x: (N, dim_in), (N, dim_in, 1, 1), or batched (B, N, dim_in).
    Returns (N, dim_out) f32 (or (B, N, dim_out) for batched input)."""
    if x.ndim == 4:
        # PyTorch: x.squeeze(3).squeeze(2) — trailing spatial dims must be 1.
        assert x.shape[2] == 1 and x.shape[3] == 1
        x = x.reshape(x.shape[0], x.shape[1])

    squeeze_out = False
    if x.ndim == 2:
        x = x[None]                                    # (1, N, dim_in)
        squeeze_out = True

    batch, n, dim_in = x.shape
    bblk = _choose_block_batch(batch, n, dim_in, c_pad, x.dtype.itemsize)
    grid = (batch // bblk,)

    flops = 2 * batch * n * dim_in * (2 * c_pad)
    transcendentals = 2 * batch * n * c_pad
    bytes_accessed = (
        x.size * x.dtype.itemsize
        + w_cat.size * w_cat.dtype.itemsize
        + b1m.size * b1m.dtype.itemsize
        + batch * n * c_pad * 4
    )

    out = pl.pallas_call(
        functools.partial(_mil_kernel, c_pad=c_pad),
        out_shape=jax.ShapeDtypeStruct((batch, n, c_pad), jnp.float32),
        grid=grid,
        in_specs=[
            pl.BlockSpec((bblk, n, dim_in), lambda b: (b, 0, 0)),
            pl.BlockSpec((dim_in, 2 * c_pad), lambda b: (0, 0)),
            pl.BlockSpec((1, c_pad), lambda b: (0, 0)),
        ],
        out_specs=pl.BlockSpec((bblk, n, c_pad), lambda b: (b, 0, 0)),
        compiler_params=pltpu.CompilerParams(
            dimension_semantics=("parallel",)),
        cost_estimate=pl.CostEstimate(
            flops=flops,
            transcendentals=transcendentals,
            bytes_accessed=bytes_accessed),
    )(x, w_cat, b1m)

    out = out[..., :dim_out]                           # drop padded lanes
    return out[0] if squeeze_out else out


def mil_forward(x, w0, b0, w1, b1):
    """Module-equivalent forward: packs params then calls the kernel.
    For repeated calls, call pack_mil_params once and reuse the packed arrays."""
    w_cat, b1m, dim_out, c_pad = pack_mil_params(w0, b0, w1, b1)
    return mil_forward_packed(x, w_cat, b1m, dim_out, c_pad)


def _mil_reference(x, w0, b0, w1, b1):
    if x.ndim == 4:
        x = x.reshape(x.shape[0], x.shape[1])
    s0 = x.astype(jnp.float32) @ w0.T + b0
    s1 = x.astype(jnp.float32) @ w1.T + b1
    return jax.nn.softmax(s0, axis=0) * jax.nn.softmax(s1, axis=1)


if __name__ == "__main__":
    # Small shapes consistent with the module: N ROIs, dim_in features.
    N, DIM_IN, DIM_OUT, B = 16, 32, 8, 4

    key = jax.random.PRNGKey(0)
    kx, kxb, kw0, kw1, kb0, kb1 = jax.random.split(key, 6)

    # Input arrives 4D (N, dim_in, 1, 1) as in detectron ROI heads.
    x = jax.random.normal(kx, (N, DIM_IN, 1, 1), dtype=jnp.float32)

    # normal(std=0.01) weights; nonzero biases to exercise the b0-cancellation
    # and fused b1+mask paths (module init uses zeros, which is a subset).
    w0 = 0.01 * jax.random.normal(kw0, (DIM_OUT, DIM_IN), dtype=jnp.float32)
    b0 = 0.1 * jax.random.normal(kb0, (DIM_OUT,), dtype=jnp.float32)
    w1 = 0.01 * jax.random.normal(kw1, (DIM_OUT, DIM_IN), dtype=jnp.float32)
    b1 = 0.1 * jax.random.normal(kb1, (DIM_OUT,), dtype=jnp.float32)

    # Pack the two linear heads into one lane-padded matmul operand set (once).
    w_cat, b1m, dim_out, c_pad = pack_mil_params(w0, b0, w1, b1)

    # --- Single-image forward (matches the PyTorch module semantics). ---
    out = mil_forward_packed(x, w_cat, b1m, dim_out, c_pad)
    out = jax.block_until_ready(out)

    ref = _mil_reference(x, w0, b0, w1, b1)
    assert out.shape == (N, DIM_OUT)
    # Tolerance loosened slightly to cover the EUP approx reciprocal.
    assert jnp.allclose(out, ref, atol=1e-4, rtol=1e-2)

    # --- Batched forward: several images packed per grid step. ---
    xb = jax.random.normal(kxb, (B, N, DIM_IN), dtype=jnp.float32)
    out_b = mil_forward_packed(xb, w_cat, b1m, dim_out, c_pad)
    out_b = jax.block_until_ready(out_b)

    ref_b = jnp.stack([_mil_reference(xb[i], w0, b0, w1, b1) for i in range(B)])
    assert out_b.shape == (B, N, DIM_OUT)
    assert jnp.allclose(out_b, ref_b, atol=1e-4, rtol=1e-2)

    print("KERNEL_OK")
</pallas_src>

<mosaic_0001>
module attributes {stable_mosaic.version = 11 : i64} {
  func.func @_mil_kernel(%arg0: i32, %arg1: memref<1x16x32xf32, #tpu.memory_space<vmem>>, %arg2: memref<32x256xf32, #tpu.memory_space<vmem>>, %arg3: memref<1x128xf32, #tpu.memory_space<vmem>>, %arg4: memref<1x16x128xf32, #tpu.memory_space<vmem>>) attributes {dimension_semantics = [#tpu.dimension_semantics<parallel>], iteration_bounds = array<i64: 1>, scalar_prefetch = 0 : i64, scratch_operands = 0 : i64, tpu.core_type = #tpu.core_type<tc>, window_params = [{transform_indices = @transform_0, window_bounds = array<i64: 1, 16, 32>}, {pipeline_mode = #tpu.pipeline_mode<synchronous>, transform_indices = @transform_1, window_bounds = array<i64: 32, 256>}, {pipeline_mode = #tpu.pipeline_mode<synchronous>, transform_indices = @transform_2, window_bounds = array<i64: 1, 128>}, {transform_indices = @transform_3, window_bounds = array<i64: 1, 16, 128>}]} {
    %c0 = arith.constant 0 : index
    %c0_0 = arith.constant 0 : index
    %c0_1 = arith.constant 0 : index
    %0 = vector.load %arg1[%c0, %c0_0, %c0_1] : memref<1x16x32xf32, #tpu.memory_space<vmem>>, vector<1x16x32xf32>
    %1 = vector.shape_cast %0 : vector<1x16x32xf32> to vector<16x32xf32>
    %c0_2 = arith.constant 0 : index
    %c0_3 = arith.constant 0 : index
    %2 = vector.load %arg2[%c0_2, %c0_3] : memref<32x256xf32, #tpu.memory_space<vmem>>, vector<32x256xf32>
    %cst = arith.constant dense<0.000000e+00> : vector<16x256xf32>
    %3 = tpu.matmul %1, %2, %cst {dimension_numbers = #tpu.dot_dimension_numbers<[1], [0], [0], [1], [0, 0, 1, 1], [], []>} : vector<16x32xf32>, vector<32x256xf32>, vector<16x256xf32> -> vector<16x256xf32>
    %4 = vector.shape_cast %3 : vector<16x256xf32> to vector<1x16x256xf32>
    %5 = vector.extract_strided_slice %4 {offsets = [0, 0, 0], sizes = [1, 16, 128], strides = [1, 1, 1]} : vector<1x16x256xf32> to vector<1x16x128xf32>
    %6 = vector.extract_strided_slice %4 {offsets = [0, 0, 128], sizes = [1, 16, 128], strides = [1, 1, 1]} : vector<1x16x256xf32> to vector<1x16x128xf32>
    %c0_4 = arith.constant 0 : index
    %c0_5 = arith.constant 0 : index
    %7 = vector.load %arg3[%c0_4, %c0_5] : memref<1x128xf32, #tpu.memory_space<vmem>>, vector<1x128xf32>
    %8 = vector.shape_cast %7 : vector<1x128xf32> to vector<1x1x128xf32>
    %9 = vector.broadcast %8 : vector<1x1x128xf32> to vector<1x16x128xf32>
    %10 = arith.addf %6, %9 : vector<1x16x128xf32>
    %cst_6 = arith.constant dense<0xFF800000> : vector<1x128xf32>
    %11 = vector.multi_reduction <maximumf>, %5, %cst_6 [1] : vector<1x16x128xf32> to vector<1x128xf32>
    %12 = vector.shape_cast %11 : vector<1x128xf32> to vector<1x1x128xf32>
    %13 = vector.broadcast %12 : vector<1x1x128xf32> to vector<1x16x128xf32>
    %14 = arith.subf %5, %13 : vector<1x16x128xf32>
    %15 = math.exp %14 : vector<1x16x128xf32>
    %cst_7 = arith.constant dense<0.000000e+00> : vector<1x128xf32>
    %16 = vector.multi_reduction <add>, %15, %cst_7 [1] : vector<1x16x128xf32> to vector<1x128xf32>
    %17 = vector.shape_cast %16 : vector<1x128xf32> to vector<1x1x128xf32>
    %18 = tpu.reciprocal %17 {approx = true} : vector<1x1x128xf32> -> vector<1x1x128xf32>
    %19 = vector.broadcast %18 : vector<1x1x128xf32> to vector<1x16x128xf32>
    %20 = arith.mulf %15, %19 : vector<1x16x128xf32>
    %cst_8 = arith.constant dense<0xFF800000> : vector<1x16xf32>
    %21 = vector.multi_reduction <maximumf>, %10, %cst_8 [2] : vector<1x16x128xf32> to vector<1x16xf32>
    %22 = vector.shape_cast %21 : vector<1x16xf32> to vector<1x16x1xf32>
    %23 = vector.broadcast %22 : vector<1x16x1xf32> to vector<1x16x128xf32>
    %24 = arith.subf %10, %23 : vector<1x16x128xf32>
    %25 = math.exp %24 : vector<1x16x128xf32>
    %cst_9 = arith.constant dense<0.000000e+00> : vector<1x16xf32>
    %26 = vector.multi_reduction <add>, %25, %cst_9 [2] : vector<1x16x128xf32> to vector<1x16xf32>
    %27 = vector.shape_cast %26 : vector<1x16xf32> to vector<1x16x1xf32>
    %28 = tpu.reciprocal %27 {approx = true} : vector<1x16x1xf32> -> vector<1x16x1xf32>
    %29 = vector.broadcast %28 : vector<1x16x1xf32> to vector<1x16x128xf32>
    %30 = arith.mulf %25, %29 : vector<1x16x128xf32>
    %31 = arith.mulf %20, %30 : vector<1x16x128xf32>
    %c0_10 = arith.constant 0 : index
    %c0_11 = arith.constant 0 : index
    %c0_12 = arith.constant 0 : index
    %32 = vector.load %arg4[%c0_10, %c0_11, %c0_12] : memref<1x16x128xf32, #tpu.memory_space<vmem>>, vector<1x16x128xf32>
    tpu.vector_store %arg4[%c0_10, %c0_11, %c0_12], %31 {strides = array<i32>} : memref<1x16x128xf32, #tpu.memory_space<vmem>>, vector<1x16x128xf32>,
    return
  }
  func.func @transform_0(%arg0: i32) -> (i32, i32, i32) {
    %c0_i32 = arith.constant 0 : i32
    %c0_i32_0 = arith.constant 0 : i32
    %c0_i32_1 = arith.constant 0 : i32
    return %arg0, %c0_i32, %c0_i32_0 : i32, i32, i32
  }
  func.func @transform_1(%arg0: i32) -> (i32, i32) {
    %c0_i32 = arith.constant 0 : i32
    %c0_i32_0 = arith.constant 0 : i32
    %c0_i32_1 = arith.constant 0 : i32
    return %c0_i32, %c0_i32_0 : i32, i32
  }
  func.func @transform_2(%arg0: i32) -> (i32, i32) {
    %c0_i32 = arith.constant 0 : i32
    %c0_i32_0 = arith.constant 0 : i32
    %c0_i32_1 = arith.constant 0 : i32
    return %c0_i32, %c0_i32_0 : i32, i32
  }
  func.func @transform_3(%arg0: i32) -> (i32, i32, i32) {
    %c0_i32 = arith.constant 0 : i32
    %c0_i32_0 = arith.constant 0 : i32
    %c0_i32_1 = arith.constant 0 : i32
    return %arg0, %c0_i32, %c0_i32_0 : i32, i32, i32
  }
}

</mosaic_0001>

<bundles_post_ra>
// kernel: tpu_custom_call.1
= control target key start
LH: loop header
LB: loop body
LE: loop exit
PB: predicated region body
PF: predicated region fallthrough
CT: control target
= control target key end

     0   :  { %8 = vsyncpa [#allocation3], 0  ;;  %s342_s0 = inlined_call_operand.hbm [shape: f32[1,16,32], index: 0, kind: input, shape index: {}]   ;;  %s343_s1 = inlined_call_operand.hbm [shape: f32[32,256], index: 1, kind: input, shape index: {}]   ;;  %s344_s2 = inlined_call_operand.vmem [shape: f32[1,128], index: 2, kind: input, shape index: {}]   ;;  %s345_s3 = inlined_call_operand.hbm [shape: f32[1,16,128], index: 3, kind: output, shape index: {}]  }
   0x1   :  { %9 = vsyncpa [#allocation6], 0 }
   0x2   :  { %10 = vsyncpa [#allocation4], 0  ;;  %s15_s14 = sshll.u32 %s342_s0, 4  ;;  %s293_s15 = smov [#allocation2]   ;;  %s16_s14 = int_to_ptr.hbm [resolvable:$true] %s15_s14 }
   0x3   :  { %s17_s16 = sshll.u32 %s293_s15, 4  ;;  %s28_s19 = sshll.u32 %s343_s1, 4  ;;  %s18_s16 = int_to_ptr.vmem [resolvable:$true] %s17_s16  ;;  %s29_s19 = int_to_ptr.hbm [resolvable:$true] %s28_s19 }
   0x4   :  { %s294_s20 = smov 128   ;;  %s295_s21 = smov 8  }
   0x5   :  { %23 = dma.hbm_to_vmem [thread:$0]  %s16_s14, 256, %s18_s16, [#allocation3], %s294_s20, %s294_s20, %s295_s21  }
   0x6   :  { %s296_s22 = smov [#allocation5]   ;;  %s297_s24 = smov 256  }
   0x7   :  { %s30_s23 = sshll.u32 %s296_s22, 4  ;;  %s298_s0 = smov 16   ;;  %s31_s23 = int_to_ptr.vmem [resolvable:$true] %s30_s23 }
   0x8   :  { %36 = dma.hbm_to_vmem [thread:$0]  %s29_s19, 1024, %s31_s23, [#allocation6], %s297_s24, %s297_s24, %s298_s0  }
   0x9   :  { %287 = dma.done.wait [#allocation3], 256  }
   0xa   :  { %288 = vsyncadd [#allocation3], 4294967040 }
   0xb   :  { %289 = dma.done.wait [#allocation6], 1024  }
   0xc   :  { %290 = vsyncadd [#allocation6], 4294966272  ;;  %v56_v0 = vld [vmem:[#allocation5 + $0x38] sm:$0xff]  ;;  %v54_v1 = vld [vmem:[#allocation5 + $0x28] sm:$0xff]  ;;  %vm57_vm0 = vcmask 261120   ;;  %s167_s29 = sshll.u32 %s345_s3, 4  ;;  %s168_s29 = int_to_ptr.hbm [resolvable:$true] %s167_s29 }
   0xd   :  { %99 = vmatpush.msra.mxu1 %v56_v0  ;;  %189 = vmatpush.msra.mxu3 %v56_v0  ;;  %v52_v2 = vld [vmem:[#allocation5 + $0x18] sm:$0xff]  ;;  %v50_v3 = vld [vmem:[#allocation5 + $0x8] sm:$0xff]  ;;  %v47_v4 = vld [vmem:[#allocation2] sm:$0xff] }
   0xe   :  { %v48_v5 = vld [vmem:[#allocation2 + $0x8] sm:$0xff]  ;;  %v55_v6 = vld [vmem:[#allocation5 + $0x30] sm:$0xff]  ;;  %v53_v7 = vld [vmem:[#allocation5 + $0x20] sm:$0xff] }
   0xf   :  { %100 = vmatpush.msra.mxu1 %v54_v1  ;;  %190 = vmatpush.msra.mxu3 %v54_v1  ;;  %v51_v8 = vld [vmem:[#allocation5 + $0x10] sm:$0xff]  ;;  %v49_v9 = vld [vmem:[#allocation5] sm:$0xff] }
  0x10   :  { %185 = vmatpush.msra.mxu2 %v55_v6  ;;  %76 = vmatpush.msra.mxu0 %v55_v6  ;;  %v200_v10 = vld [vmem:[%s344_s2] ss:$0 sm:$0xff]  ;;  %s299_s2 = smov [#allocation7]  }
  0x11   :  { %101 = vmatpush.msra.mxu1 %v52_v2  ;;  %191 = vmatpush.msra.mxu3 %v52_v2  ;;  %s165_s26 = sshll.u32 %s299_s2, 4  ;;  %s166_s26 = int_to_ptr.vmem [resolvable:$true] %s165_s26 }
  0x12   :  { %186 = vmatpush.msra.mxu2 %v53_v7  ;;  %77 = vmatpush.msra.mxu0 %v53_v7 }
  0x13   :  { %102 = vmatpush.msra.mxu1 %v50_v3  ;;  %192 = vmatpush.msra.mxu3 %v50_v3 }
  0x14   :  { %183 = vmatmul.msk.f32.vlgmr.msra.gmra.mxu1 %vm57_vm0, %v47_v4  ;;  %184 = vmatmul.msk.f32.vlgmr.msra.gmra.mxu3 %vm57_vm0, %v48_v5 }
  0x15   :  { %187 = vmatpush.msra.mxu2 %v51_v8  ;;  %78 = vmatpush.msra.mxu0 %v51_v8 }
  0x17   :  { %188 = vmatpush.msra.mxu2 %v49_v9  ;;  %79 = vmatpush.msra.mxu0 %v49_v9 }
  0x18   :  { %182 = vmatmul.msk.f32.vlgmr.msra.gmra.mxu2 %vm57_vm0, %v48_v5  ;;  %181 = vmatmul.msk.f32.vlgmr.msra.gmra.mxu0 %vm57_vm0, %v47_v4 }
  0x91   :  { %v104_v11 = vpop.f32.mrf.mxu1 }
  0x92   :  { %v114_v12 = vadd.f32 %v200_v10, %v104_v11 }
  0x94   :  { %139 = vmax.xlane.f32.xlu0 %v114_v12 }
  0x95   :  { %v81_v23 = vpop.f32.mrf.mxu0 }
  0x97   :  { %v107_v13 = vpop.f32.mrf.mxu3 }
  0x98   :  { %v115_v14 = vadd.f32 %v200_v10, %v107_v13 }
  0x9b   :  { %v84_v24 = vpop.f32.mrf.mxu2 }
  0x9c   :  { %141 = vmax.xlane.f32.xlu0 %v115_v14  ;;  %v116_v25 = vmax.f32 %v81_v23, %v84_v24 }
  0x9e   :  { %v117_v26 = vrot.slane %v116_v25, 4 }
  0xa0   :  { %v118_v27 = vmax.f32 %v116_v25, %v117_v26 }
  0xa2   :  { %v119_v28 = vrot.slane %v118_v27, 2 }
  0xa4   :  { %v120_v29 = vmax.f32 %v118_v27, %v119_v28 }
  0xa6   :  { %v121_v30 = vrot.slane %v120_v29, 1 }
  0xa8   :  { %v122_v31 = vmax.f32 %v120_v29, %v121_v30 }
  0xaa   :  { %v123_v32 = vsub.f32 %v81_v23, %v122_v31  ;;  %v124_v33 = vsub.f32 %v84_v24, %v122_v31 }
  0xac   :  { %v125_v34 = vmul.f32 1.442695, %v123_v32  ;;  %v127_v35 = vmul.f32 1.442695, %v124_v33 }
 0x107   :  { %v140_v15 = vpop.xlane.xlu0 %139 }
 0x108   :  { %v143_v16 = vsub.f32 %v114_v12, %v140_v15 }
 0x10a   :  { %v145_v17 = vmul.f32 1.442695, %v143_v16 }
 0x10c   :  { %201 = vpow2.f32 %v145_v17 }
 0x10f   :  { %v142_v18 = vpop.xlane.xlu0 %141 }
 0x110   :  { %v144_v19 = vsub.f32 %v115_v14, %v142_v18 }
 0x112   :  { %v202_v20 = vpop.eup %201  ;;  %v147_v21 = vmul.f32 1.442695, %v144_v19 }
 0x113   :  { %149 = vadd.xlane.f32.xlu1 %v202_v20 }
 0x114   :  { %203 = vpow2.f32 %v147_v21 }
 0x115   :  { %205 = vpow2.f32 %v125_v34 }
 0x116   :  { %207 = vpow2.f32 %v127_v35 }
 0x11a   :  { %v204_v22 = vpop.eup %203 }
 0x11b   :  { %151 = vadd.xlane.f32.xlu1 %v204_v22  ;;  %v206_v36 = vpop.eup %205 }
 0x11c   :  { %v208_v37 = vpop.eup %207 }
 0x11d   :  { %v129_v38 = vadd.f32 %v208_v37, %v206_v36 }
 0x11f   :  { %v130_v39 = vrot.slane %v129_v38, 4 }
 0x121   :  { %v131_v40 = vadd.f32 %v130_v39, %v129_v38 }
 0x123   :  { %v132_v41 = vrot.slane %v131_v40, 2 }
 0x125   :  { %v133_v42 = vadd.f32 %v132_v41, %v131_v40 }
 0x127   :  { %v134_v43 = vrot.slane %v133_v42, 1 }
 0x129   :  { %v135_v44 = vadd.f32 %v134_v43, %v133_v42 }
 0x12b   :  { %209 = vrcp.f32 %v135_v44 }
 0x131   :  { %v210_v46 = vpop.eup %209 }
 0x132   :  { %v137_v50 = vmul.f32 %v210_v46, %v206_v36  ;;  %v138_v53 = vmul.f32 %v210_v46, %v208_v37 }
 0x186   :  { %v150_v45 = vpop.xlane.xlu1 %149 }
 0x187   :  { %211 = vrcp.f32 %v150_v45 }
 0x18d   :  { %v212_v47 = vpop.eup %211 }
 0x18e   :  { %v155_v48 = vmul.f32 %v212_v47, %v202_v20  ;;  %v152_v49 = vpop.xlane.xlu1 %151 }
 0x18f   :  { %213 = vrcp.f32 %v152_v49 }
 0x190   :  { %v157_v51 = vmul.f32 %v155_v48, %v137_v50 }
 0x192   :  { %159 = vst [vmem:[#allocation7] sm:$0xff] %v157_v51 }
 0x195   :  { %v214_v52 = vpop.eup %213 }
 0x196   :  { %v156_v54 = vmul.f32 %v214_v52, %v204_v22 }
 0x198   :  { %v158_v55 = vmul.f32 %v156_v54, %v138_v53 }
 0x19a   :  { %160 = vst [vmem:[#allocation7 + $0x8] sm:$0xff] %v158_v55 }
 0x19b   :  { %173 = dma.vmem_to_hbm [thread:$0]  %s166_s26, 256, %s168_s29, [#allocation4], %s294_s20, %s294_s20, %s295_s21  }
 0x19c   :  { %291 = dma.done.wait [#allocation4], 256  }
 0x19d   :  { %292 = vsyncadd [#allocation4], 4294967040 }
 0x19e   :  { %178 = vsyncpa [#allocation3], 1 }
 0x19f   :  { %179 = vsyncpa [#allocation6], 1 }
 0x1a0   :  { %180 = vsyncpa [#allocation4], 1 }

</bundles_post_ra>
